<compile_context>
chip_gen: v7x
topology: tpu7x:2x2x1
jax: 0.10.0
libtpu: 0.0.40
codegen_flags: <defaults>
</compile_context>

<pallas_src>
import numpy as np

import jax
import jax.numpy as jnp
from jax.experimental import pallas as pl
from jax.experimental.pallas import tpu as pltpu


# ----------------------------------------------------------------------------
# numpy anchor helpers (identical to the reference implementation)
# ----------------------------------------------------------------------------
def generate_anchors(base_size=16, ratios=None, scales=None):
    if ratios is None:
        ratios = np.array([0.5, 1, 2])
    if scales is None:
        scales = np.array([2 ** 0, 2 ** (1.0 / 3.0), 2 ** (2.0 / 3.0)])
    num_anchors = len(ratios) * len(scales)
    anchors = np.zeros((num_anchors, 4))
    anchors[:, 2:] = base_size * np.tile(scales, (2, len(ratios))).T
    areas = anchors[:, 2] * anchors[:, 3]
    anchors[:, 2] = np.sqrt(areas / np.repeat(ratios, len(scales)))
    anchors[:, 3] = anchors[:, 2] * np.repeat(ratios, len(scales))
    anchors[:, 0::2] -= np.tile(anchors[:, 2] * 0.5, (2, 1)).T
    anchors[:, 1::2] -= np.tile(anchors[:, 3] * 0.5, (2, 1)).T
    return anchors


def shift(shape, stride, anchors):
    shift_x = (np.arange(0, shape[1]) + 0.5) * stride
    shift_y = (np.arange(0, shape[0]) + 0.5) * stride
    shift_x, shift_y = np.meshgrid(shift_x, shift_y)
    shifts = np.vstack((shift_x.ravel(), shift_y.ravel(),
                        shift_x.ravel(), shift_y.ravel())).transpose()
    A = anchors.shape[0]
    K = shifts.shape[0]
    all_anchors = (anchors.reshape((1, A, 4)) +
                   shifts.reshape((1, K, 4)).transpose((1, 0, 2)))
    all_anchors = all_anchors.reshape((K * A, 4))
    return all_anchors


# ----------------------------------------------------------------------------
# Pallas kernel: useful_mask for all batches in one invocation
# ----------------------------------------------------------------------------
def _useful_mask_kernel(calib_ref, slab_ref, mask_ref):
    """calib_ref: VMEM (B, 3) f32  -- per batch [1/fy, cy, cx]
       slab_ref:  VMEM (8, Np) f32 -- rows: [xc, yc, y_min/z, y_max/z, x_thr/z,
                                             pad, pad, pad]  (z = min-over-type
                                             depth prior per anchor)
       mask_ref:  VMEM (B, Np) int32 output (1 = useful anchor).
       Padded lanes of the threshold rows are (+inf, -inf, -1) so they can
       never satisfy the condition -> padded mask columns are always 0."""
    xc = slab_ref[0:1, :]                        # (1, Np)
    yc = slab_ref[1:2, :]                        # (1, Np)
    y_lo = slab_ref[2:3, :]                      # (1, Np)
    y_hi = slab_ref[3:4, :]                      # (1, Np)
    x_th = slab_ref[4:5, :]                      # (1, Np)

    inv_fy = calib_ref[:, 0:1]                   # (B, 1)
    cy = calib_ref[:, 1:2]                       # (B, 1)
    cx = calib_ref[:, 2:3]                       # (B, 1)

    # All batches at once via (B,1) x (1,Np) broadcasting -> (B, Np).
    tx = (xc - cx) * inv_fy
    ty = (yc - cy) * inv_fy
    cond = (ty > y_lo) & (ty < y_hi) & (jnp.abs(tx) < x_th)   # (B, Np) bool
    mask_ref[...] = cond.astype(jnp.int32)       # single lane-dense store


def useful_mask_pallas(calib_mat, slab):
    B = calib_mat.shape[0]
    n_pad = slab.shape[1]
    return pl.pallas_call(
        _useful_mask_kernel,
        out_shape=jax.ShapeDtypeStruct((B, n_pad), jnp.int32),
        in_specs=[
            pl.BlockSpec(memory_space=pltpu.MemorySpace.VMEM),   # calib (B,3)
            pl.BlockSpec(memory_space=pltpu.MemorySpace.VMEM),   # slab (8,Np)
        ],
        out_specs=pl.BlockSpec(memory_space=pltpu.MemorySpace.VMEM),
    )(calib_mat, slab)


# ----------------------------------------------------------------------------
# Module wrapper
# ----------------------------------------------------------------------------
class AnchorsPallas:
    def __init__(self, pyramid_levels, strides, sizes, ratios, scales,
                 readConfigFile=1, obj_types=(), filter_anchors=True,
                 filter_y_threshold_min_max=(-0.5, 1.8),
                 filter_x_threshold=40.0, anchor_prior_channel=6):
        self.pyramid_levels = pyramid_levels
        self.strides = strides
        self.sizes = sizes
        self.ratios = np.asarray(ratios)
        self.scales = np.asarray(scales)
        self.readConfigFile = readConfigFile
        self.scale_step = 1 / (np.log2(self.scales[1]) - np.log2(self.scales[0]))
        self.filter_y_threshold_min_max = filter_y_threshold_min_max
        self.filter_x_threshold = filter_x_threshold
        self.shape = None

        if self.readConfigFile:
            # TODO(synk): the original module loads anchor_mean/std_{type}.npy
            # from preprocessed_path; deterministic synthetic priors are
            # substituted so this script is self-contained.
            T = len(obj_types)
            prior_shape = (T, len(self.scales) * len(self.pyramid_levels),
                           len(self.ratios), anchor_prior_channel)
            flat = np.arange(int(np.prod(prior_shape)),
                             dtype=np.float64).reshape(prior_shape)
            self.anchors_mean_original = np.sin(0.37 * flat) * 0.5
            # channel 0 is the depth prior z -> strictly positive & deterministic
            nz = int(np.prod(prior_shape[:-1]))
            self.anchors_mean_original[..., 0] = np.linspace(
                5.0, 45.0, nz).reshape(prior_shape[:-1])
            self.anchors_std_original = np.cos(0.23 * flat) * 0.4 + 0.6

    def anchors2indexes(self, anchors):
        sizes = np.sqrt((anchors[:, 2] - anchors[:, 0]) *
                        (anchors[:, 3] - anchors[:, 1]))
        sizes_diff = sizes - (np.array(self.sizes) * np.array(self.scales))[:, np.newaxis]
        sizes_int = np.argmin(np.abs(sizes_diff), axis=0)
        ratio = (anchors[:, 3] - anchors[:, 1]) / (anchors[:, 2] - anchors[:, 0])
        ratio_diff = ratio - np.array(self.ratios)[:, np.newaxis]
        ratio_int = np.argmin(np.abs(ratio_diff), axis=0)
        return sizes_int, ratio_int

    def _build_anchors(self, image_shape_hw):
        image_shape = np.array(image_shape_hw)
        image_shapes = [(image_shape + 2 ** x - 1) // 2 ** x
                        for x in self.pyramid_levels]
        all_anchors = np.zeros((0, 4)).astype(np.float32)
        for idx, _p in enumerate(self.pyramid_levels):
            anchors = generate_anchors(base_size=self.sizes[idx],
                                       ratios=self.ratios, scales=self.scales)
            shifted_anchors = shift(image_shapes[idx], self.strides[idx], anchors)
            all_anchors = np.append(all_anchors, shifted_anchors, axis=0)
        return all_anchors.astype(np.float32)

    def forward(self, image, calibs, is_filtering=False):
        shape = tuple(image.shape[2:])
        if self.shape is None or shape != self.shape:
            self.shape = shape
            all_anchors = self._build_anchors(shape)          # (N, 4) numpy f32
            N = all_anchors.shape[0]
            self._num_anchors = N
            n_pad = ((N + 127) // 128) * 128                  # lane-dense pad
            self._n_pad = n_pad

            xc = (0.5 * (all_anchors[:, 0] + all_anchors[:, 2])).astype(np.float32)
            yc = (0.5 * (all_anchors[:, 1] + all_anchors[:, 3])).astype(np.float32)
            self.anchors_image_x_center = jnp.asarray(xc)
            self.anchors_image_y_center = jnp.asarray(yc)

            if self.readConfigFile:
                sizes_int, ratio_int = self.anchors2indexes(all_anchors)
                means = self.anchors_mean_original[:, sizes_int, ratio_int]   # (T,N,6)
                stds = self.anchors_std_original[:, sizes_int, ratio_int]     # (T,N,6)
                self.anchor_means = jnp.asarray(means, dtype=jnp.float32)
                self.anchor_stds = jnp.asarray(stds, dtype=jnp.float32)
                self.anchor_mean_std = jnp.transpose(
                    jnp.stack([self.anchor_means, self.anchor_stds], axis=-1),
                    (1, 0, 2, 3))                                             # (N,T,6,2)

                az = means[:, :, 0].astype(np.float32)                        # (T,N)
                assert np.all(az > 0.0), "anchor z prior must be > 0"
                y_min, y_max = self.filter_y_threshold_min_max
                x_thr = self.filter_x_threshold
                # Host-side collapse over object types: with z > 0 and
                # y_min < 0 < y_max, x_thr > 0 the per-type thresholds are
                # nested (widest for the smallest z), so "any over types" is
                # exactly the condition at z_min.  (Module defaults satisfy
                # this; other threshold signs would need the per-type path.)
                assert y_min < 0.0 < y_max and x_thr > 0.0
                z_min = az.min(axis=0)                                        # (N,)

                slab = np.zeros((8, n_pad), dtype=np.float32)
                slab[0, :N] = xc
                slab[1, :N] = yc
                slab[2, :N] = np.float32(y_min) / z_min
                slab[3, :N] = np.float32(y_max) / z_min
                slab[4, :N] = np.float32(x_thr) / z_min
                # padded lanes can never satisfy the condition:
                slab[2, N:] = np.inf
                slab[3, N:] = -np.inf
                slab[4, N:] = -1.0
                self._slab_np = slab
                self._slab = jnp.asarray(slab)

            self.anchors = jnp.asarray(all_anchors[None], dtype=jnp.float32)  # (1,N,4)

        if calibs is not None and calibs.shape[0] > 0:
            P2 = calibs.astype(jnp.float32)                    # (B, 3, 4)
            B = P2.shape[0]
            N = self._num_anchors
            fy = P2[:, 1, 1]
            cy = P2[:, 1, 2]
            cx = P2[:, 0, 2]
            calib_mat = jnp.stack([1.0 / fy, cy, cx], axis=-1)  # (B, 3) f32

            if self.readConfigFile and is_filtering:
                raw = useful_mask_pallas(calib_mat, self._slab)  # (B, N_pad) i32
                # lane-dense padded buffer (padded columns already 0) for
                # downstream consumers; slice only for the module contract.
                self.useful_mask_padded = raw
                self.useful_mask = raw[:, :N].astype(jnp.bool_)  # (B, N) bool
            else:
                self.useful_mask = jnp.ones((B, N), dtype=jnp.bool_)

            if self.readConfigFile:
                return self.anchors, self.useful_mask, self.anchor_mean_std
            return self.anchors, self.useful_mask
        return self.anchors


# ----------------------------------------------------------------------------
# main
# ----------------------------------------------------------------------------
if __name__ == "__main__":
    key = jax.random.PRNGKey(0)
    B, C, H, W = 2, 3, 32, 32
    image = jax.random.normal(key, (B, C, H, W), dtype=jnp.float32)

    # Deterministic P2 camera matrices (B, 3, 4): image-centred principal
    # point + short focal length so the mask is a genuine True/False mix.
    p2 = np.zeros((B, 3, 4), dtype=np.float32)
    p2[0, 0, 0], p2[0, 1, 1], p2[0, 0, 2], p2[0, 1, 2], p2[0, 2, 2] = 35.0, 35.0, 16.0, 18.0, 1.0
    p2[1, 0, 0], p2[1, 1, 1], p2[1, 0, 2], p2[1, 1, 2], p2[1, 2, 2] = 40.0, 40.0, 15.0, 17.0, 1.0
    calibs = jnp.asarray(p2)

    obj_types = ["Car", "Pedestrian"]
    model = AnchorsPallas(
        pyramid_levels=[3, 4, 5],
        strides=[8, 16, 32],
        sizes=[24, 48, 96],
        ratios=np.array([0.5, 1.0, 2.0]),
        scales=np.array([2 ** 0, 2 ** (1.0 / 3.0), 2 ** (2.0 / 3.0)]),
        readConfigFile=1,
        obj_types=obj_types,
    )

    anchors, useful_mask, anchor_mean_std = model.forward(
        image, calibs, is_filtering=True)
    jax.block_until_ready((anchors, useful_mask, anchor_mean_std))

    N = model._num_anchors
    T = len(obj_types)
    slab = model._slab_np
    xc = slab[0, :N]                                           # (N,) f32
    yc = slab[1, :N]
    az = np.asarray(model.anchor_means)[:, :, 0]               # (T, N) f32
    fy_np, cy_np, cx_np = p2[:, 1, 1], p2[:, 1, 2], p2[:, 0, 2]
    y_min, y_max = model.filter_y_threshold_min_max
    x_thr = model.filter_x_threshold

    # Reference 1: ORIGINAL PyTorch op order: (xc*z - cx*z)/fy, any over types.
    ref_orig = []
    for b in range(B):
        wx = (xc[None, :] * az - cx_np[b] * az) / fy_np[b]
        wy = (yc[None, :] * az - cy_np[b] * az) / fy_np[b]
        cond = ((wy > np.float32(y_min)) & (wy < np.float32(y_max))
                & (np.abs(wx) < np.float32(x_thr)))
        ref_orig.append(np.any(cond, axis=0))
    ref_orig = np.stack(ref_orig, axis=0)

    # Reference 2: same algebra as the kernel (hoisted per-type thresholds).
    ymin_z = np.float32(y_min) / az
    ymax_z = np.float32(y_max) / az
    xthr_z = np.float32(x_thr) / az
    ref_hoist = []
    for b in range(B):
        inv_fy = np.float32(1.0) / fy_np[b]
        tx = (xc - cx_np[b]) * inv_fy
        ty = (yc - cy_np[b]) * inv_fy
        cond = ((ty[None, :] > ymin_z) & (ty[None, :] < ymax_z)
                & (np.abs(tx)[None, :] < xthr_z))
        ref_hoist.append(np.any(cond, axis=0))
    ref_hoist = np.stack(ref_hoist, axis=0)

    got = np.asarray(useful_mask)

    assert anchors.shape == (1, N, 4)
    assert np.allclose(np.asarray(anchors)[0], model._build_anchors((H, W)))
    assert anchor_mean_std.shape == (N, T, 6, 2)
    assert useful_mask.shape == (B, N) and useful_mask.dtype == jnp.bool_
    assert np.array_equal(got, ref_hoist), (
        f"mask mismatch vs refactored reference: {np.sum(got != ref_hoist)} / {got.size}")
    assert np.array_equal(got, ref_orig), (
        f"mask mismatch vs original-op-order reference: {np.sum(got != ref_orig)} / {got.size}")
    padded = np.asarray(model.useful_mask_padded)
    assert not padded[:, N:].any(), "padded lanes must be 0"
    for b in range(B):
        assert got[b].any() and (~got[b]).any(), f"degenerate mask in batch {b}"

    print("KERNEL_OK")
</pallas_src>

<mosaic_0001>
module attributes {stable_mosaic.version = 11 : i64} {
  func.func @_useful_mask_kernel(%arg0: memref<2x3xf32, #tpu.memory_space<vmem>>, %arg1: memref<8x256xf32, #tpu.memory_space<vmem>>, %arg2: memref<2x256xi32, #tpu.memory_space<vmem>>) attributes {dimension_semantics = [], scalar_prefetch = 0 : i64, scratch_operands = 0 : i64, tpu.core_type = #tpu.core_type<tc>} {
    %c0 = arith.constant 0 : index
    %c0_0 = arith.constant 0 : index
    %0 = vector.load %arg1[%c0, %c0_0] : memref<8x256xf32, #tpu.memory_space<vmem>>, vector<1x256xf32>
    %c1 = arith.constant 1 : index
    %c0_1 = arith.constant 0 : index
    %1 = vector.load %arg1[%c1, %c0_1] : memref<8x256xf32, #tpu.memory_space<vmem>>, vector<1x256xf32>
    %c2 = arith.constant 2 : index
    %c0_2 = arith.constant 0 : index
    %2 = vector.load %arg1[%c2, %c0_2] : memref<8x256xf32, #tpu.memory_space<vmem>>, vector<1x256xf32>
    %c3 = arith.constant 3 : index
    %c0_3 = arith.constant 0 : index
    %3 = vector.load %arg1[%c3, %c0_3] : memref<8x256xf32, #tpu.memory_space<vmem>>, vector<1x256xf32>
    %c4 = arith.constant 4 : index
    %c0_4 = arith.constant 0 : index
    %4 = vector.load %arg1[%c4, %c0_4] : memref<8x256xf32, #tpu.memory_space<vmem>>, vector<1x256xf32>
    %c0_5 = arith.constant 0 : index
    %c0_6 = arith.constant 0 : index
    %5 = vector.load %arg0[%c0_5, %c0_6] : memref<2x3xf32, #tpu.memory_space<vmem>>, vector<2x1xf32>
    %c0_7 = arith.constant 0 : index
    %c1_8 = arith.constant 1 : index
    %6 = vector.load %arg0[%c0_7, %c1_8] : memref<2x3xf32, #tpu.memory_space<vmem>>, vector<2x1xf32>
    %c0_9 = arith.constant 0 : index
    %c2_10 = arith.constant 2 : index
    %7 = vector.load %arg0[%c0_9, %c2_10] : memref<2x3xf32, #tpu.memory_space<vmem>>, vector<2x1xf32>
    %8 = vector.broadcast %0 : vector<1x256xf32> to vector<2x256xf32>
    %9 = vector.broadcast %7 : vector<2x1xf32> to vector<2x256xf32>
    %10 = arith.subf %8, %9 : vector<2x256xf32>
    %11 = vector.broadcast %5 : vector<2x1xf32> to vector<2x256xf32>
    %12 = arith.mulf %10, %11 : vector<2x256xf32>
    %13 = vector.broadcast %1 : vector<1x256xf32> to vector<2x256xf32>
    %14 = vector.broadcast %6 : vector<2x1xf32> to vector<2x256xf32>
    %15 = arith.subf %13, %14 : vector<2x256xf32>
    %16 = vector.broadcast %5 : vector<2x1xf32> to vector<2x256xf32>
    %17 = arith.mulf %15, %16 : vector<2x256xf32>
    %18 = vector.broadcast %2 : vector<1x256xf32> to vector<2x256xf32>
    %19 = arith.cmpf ogt, %17, %18 : vector<2x256xf32>
    %20 = vector.broadcast %3 : vector<1x256xf32> to vector<2x256xf32>
    %21 = arith.cmpf olt, %17, %20 : vector<2x256xf32>
    %22 = arith.andi %19, %21 : vector<2x256xi1>
    %23 = math.absf %12 : vector<2x256xf32>
    %24 = vector.broadcast %4 : vector<1x256xf32> to vector<2x256xf32>
    %25 = arith.cmpf olt, %23, %24 : vector<2x256xf32>
    %26 = arith.andi %22, %25 : vector<2x256xi1>
    %27 = arith.extui %26 : vector<2x256xi1> to vector<2x256xi32>
    %c0_11 = arith.constant 0 : index
    %c0_12 = arith.constant 0 : index
    %28 = vector.load %arg2[%c0_11, %c0_12] : memref<2x256xi32, #tpu.memory_space<vmem>>, vector<2x256xi32>
    tpu.vector_store %arg2[%c0_11, %c0_12], %27 {strides = array<i32>} : memref<2x256xi32, #tpu.memory_space<vmem>>, vector<2x256xi32>,
    return
  }
}

</mosaic_0001>

<bundles_post_ra>
// kernel: tpu_custom_call.1
= control target key start
LH: loop header
LB: loop body
LE: loop exit
PB: predicated region body
PF: predicated region fallthrough
CT: control target
= control target key end

     0   :  { %7 = vsyncpa [#allocation3], 0  ;;  %s300_s0 = inlined_call_operand.hbm [shape: f32[2,3], index: 0, kind: input, shape index: {}]   ;;  %s301_s1 = inlined_call_operand.hbm [shape: f32[8,256], index: 1, kind: input, shape index: {}]   ;;  %s302_s2 = inlined_call_operand.hbm [shape: s32[2,256], index: 2, kind: output, shape index: {}]  }
   0x1   :  { %8 = vsyncpa [#allocation6], 0 }
   0x2   :  { %9 = vsyncpa [#allocation4], 0  ;;  %s243_s9 = smov [#allocation2]   ;;  %s244_s11 = smov [#allocation5]  }
   0x3   :  { %s16_s10 = sshll.u32 %s243_s9, 4  ;;  %s26_s12 = sshll.u32 %s244_s11, 4  ;;  %s17_s10 = int_to_ptr.vmem [resolvable:$true] %s16_s10  ;;  %s27_s12 = int_to_ptr.vmem [resolvable:$true] %s26_s12 }
   0x4   :  { %s171_s15 = scalar_lea.hbm %s300_s0, 32 }
   0x5   :  { %p172_p0 = scmp.ne.s32.totalorder %s300_s0, %s171_s15  ;;  %p175_p1 = scmp.lt.u32.totalorder %s171_s15, %s300_s0 }
   0x7   :  { %p177_p2 = pnand %p175_p1, %p172_p0 }
   0x9   :  { %180 = shalt.err (!%p177_p2)
}
   0xa   :  { %s181_s20 = scalar_lea.vmem %s17_s10, 32  ;;  %p186_p4 = scmp.lt.s32.totalorder %s17_s10, %s17_s10 }
   0xb   :  { %p182_p3 = scmp.ne.s32.totalorder %s17_s10, %s181_s20  ;;  %p187_p5 = scmp.lt.s32.totalorder %s181_s20, %s181_s20 }
   0xd   :  { %p188_p6 = por %p187_p5, %p186_p4 }
   0xf   :  { %p189_p7 = pnand %p188_p6, %p182_p3 }
  0x11   :  { %192 = shalt.err (!%p189_p7)
}
  0x12   :  { %19 = dma.hbm_to_vmem [thread:$0]  %s300_s0, 32, %s17_s10, [#allocation3]  }
  0x13   :  { %s193_s25 = scalar_lea.hbm %s301_s1, 256 }
  0x14   :  { %p194_p8 = scmp.ne.s32.totalorder %s301_s1, %s193_s25  ;;  %p197_p9 = scmp.lt.u32.totalorder %s193_s25, %s301_s1 }
  0x16   :  { %p199_p10 = pnand %p197_p9, %p194_p8 }
  0x18   :  { %202 = shalt.err (!%p199_p10)
}
  0x19   :  { %s203_s30 = scalar_lea.vmem %s27_s12, 256  ;;  %p208_p12 = scmp.lt.s32.totalorder %s27_s12, %s27_s12 }
  0x1a   :  { %p204_p11 = scmp.ne.s32.totalorder %s27_s12, %s203_s30  ;;  %p209_p13 = scmp.lt.s32.totalorder %s203_s30, %s203_s30 }
  0x1c   :  { %p210_p0 = por %p209_p13, %p208_p12 }
  0x1e   :  { %p211_p1 = pnand %p210_p0, %p204_p11 }
  0x20   :  { %214 = shalt.err (!%p211_p1)
}
  0x21   :  { %29 = dma.hbm_to_vmem [thread:$0]  %s301_s1, 256, %s27_s12, [#allocation6]  }
  0x22   :  { %237 = dma.done.wait [#allocation3], 32  }
  0x23   :  { %238 = vsyncadd [#allocation3], 4294967264 }
  0x24   :  { %239 = dma.done.wait [#allocation6], 256  }
  0x25   :  { %240 = vsyncadd [#allocation6], 4294967040  ;;  %v245_v0 = vmov 2   ;;  %v246_v1 = vmov 0   ;;  %v45_v2 = vld [vmem:[#allocation2] sm:$0x3]  ;;  %v47_v4 = vlaneseq }
  0x26   :  { %168 = vset.pattern.permute.xlu0 %v245_v0  ;;  %170 = vset.pattern.permute.xlu1 %v246_v1  ;;  %v247_v3 = vmov 1   ;;  %v36_v8 = vld [vmem:[#allocation5] ss:$8 sm:$0x3]  ;;  %s248_s1 = smov [#allocation7]  }
  0x27   :  { %59 = vperm.xlu0 %168, %v45_v2   ;;  %65 = vperm.xlu1 %170, %v45_v2   ;;  %v48_v5 = vshrl.u32 %v47_v4, 7  ;;  %v38_v11 = vld [vmem:[#allocation5 + $0x1] ss:$8 sm:$0x3]  ;;  %s151_s4 = sshll.u32 %s248_s1, 4  ;;  %s152_s4 = int_to_ptr.vmem [resolvable:$true] %s151_s4 }
  0x28   :  { %v40_v16 = vld [vmem:[#allocation5 + $0x2] ss:$8 sm:$0x3]  ;;  %v42_v19 = vld [vmem:[#allocation5 + $0x3] ss:$8 sm:$0x3]  ;;  %p220_p3 = scmp.lt.s32.totalorder %s152_s4, %s152_s4 }
  0x29   :  { %v49_v6 = vsub.s32 0, %v48_v5  ;;  %v53_v7 = vsub.s32 1, %v48_v5  ;;  %v44_v21 = vld [vmem:[#allocation5 + $0x4] ss:$8 sm:$0x3]  ;;  %s215_s5 = scalar_lea.vmem %s152_s4, 64 }
  0x2a   :  { %p216_p2 = scmp.ne.s32.totalorder %s152_s4, %s215_s5  ;;  %p221_p4 = scmp.lt.s32.totalorder %s215_s5, %s215_s5 }
  0x2b   :  { %169 = vset.pattern.permute.xlu0 %v247_v3  ;;  %v50_v9 = vrot.slane %v36_v8, %v49_v6  ;;  %v54_v10 = vrot.slane %v36_v8, %v53_v7  ;;  %v74_v17 = vrot.slane %v38_v11, %v49_v6  ;;  %v78_v18 = vrot.slane %v38_v11, %v53_v7 }
  0x2c   :  { %82 = vperm.xlu0 %169, %v45_v2   ;;  %v93_v24 = vrot.slane %v40_v16, %v49_v6  ;;  %v97_v25 = vrot.slane %v40_v16, %v53_v7  ;;  %v106_v28 = vrot.slane %v42_v19, %v49_v6  ;;  %v110_v29 = vrot.slane %v42_v19, %v53_v7  ;;  %p222_p5 = por %p221_p4, %p220_p3 }
  0x2d   :  { %v123_v31 = vrot.slane %v44_v21, %v49_v6  ;;  %v127_v35 = vrot.slane %v44_v21, %v53_v7 }
  0x2e   :  { %p223_p6 = pnand %p222_p5, %p216_p2 }
  0xa6   :  { %v60_v12 = vpop.permute.xlu0 %59  ;;  %v66_v15 = vpop.permute.xlu1 %65 }
  0xa7   :  { %v62_v13 = vsub.f32 %v50_v9, %v60_v12  ;;  %v63_v14 = vsub.f32 %v54_v10, %v60_v12 }
  0xa9   :  { %v68_v20 = vmul.f32 %v66_v15, %v62_v13  ;;  %v69_v22 = vmul.f32 %v66_v15, %v63_v14 }
  0xab   :  { %v83_v23 = vpop.permute.xlu0 %82  ;;  %v117_v30 = vand.u32 2147483647, %v68_v20  ;;  %v118_v34 = vand.u32 2147483647, %v69_v22 }
  0xac   :  { %v85_v26 = vsub.f32 %v74_v17, %v83_v23  ;;  %v86_v27 = vsub.f32 %v78_v18, %v83_v23 }
  0xad   :  { %vm130_vm5 = vcmp.lt.f32.partialorder %v117_v30, %v123_v31  ;;  %vm131_vm7 = vcmp.lt.f32.partialorder %v118_v34, %v127_v35 }
  0xae   :  { %v87_v32 = vmul.f32 %v85_v26, %v66_v15  ;;  %v88_v33 = vmul.f32 %v86_v27, %v66_v15 }
  0xb0   :  { %vm100_vm0 = vcmp.gt.f32.partialorder %v87_v32, %v93_v24  ;;  %vm101_vm1 = vcmp.gt.f32.partialorder %v88_v33, %v97_v25  ;;  %vm113_vm2 = vcmp.lt.f32.partialorder %v87_v32, %v106_v28  ;;  %vm114_vm3 = vcmp.lt.f32.partialorder %v88_v33, %v110_v29 }
  0xb1   :  { %vm115_vm4 = vmand %vm100_vm0, %vm113_vm2 }
  0xb2   :  { %vm116_vm6 = vmand %vm101_vm1, %vm114_vm3 }
  0xb3   :  { %vm132_vm8 = vmand %vm115_vm4, %vm130_vm5 }
  0xb4   :  { %vm133_vm9 = vmand %vm116_vm6, %vm131_vm7  ;;  %v134_v36 = vsel %vm132_vm8, 1, %v246_v1 }
  0xb5   :  { %v135_v37 = vsel %vm133_vm9, 1, %v246_v1 }
  0xb6   :  { %v136_v38 = vcombine.low %v134_v36, %v135_v37 }
  0xb8   :  { %161 = vst.sshfl [vmem:[#allocation7] sm:$0x33 pattern:$0x76325410] %v136_v38 }
  0xb9   :  { %226 = shalt.err (!%p223_p6)
}
  0xba   :  { %s227_s8 = scalar_lea.hbm %s302_s2, 64 }
  0xbb   :  { %p228_p7 = scmp.ne.s32.totalorder %s302_s2, %s227_s8  ;;  %p231_p8 = scmp.lt.u32.totalorder %s227_s8, %s302_s2 }
  0xbd   :  { %p233_p9 = pnand %p231_p8, %p228_p7 }
  0xbf   :  { %236 = shalt.err (!%p233_p9)
}
  0xc0   :  { %154 = dma.vmem_to_hbm [thread:$0]  %s152_s4, 64, %s302_s2, [#allocation4]  }
  0xc1   :  { %241 = dma.done.wait [#allocation4], 64  }
  0xc2   :  { %242 = vsyncadd [#allocation4], 4294967232 }
  0xc3   :  { %158 = vsyncpa [#allocation3], 1 }
  0xc4   :  { %159 = vsyncpa [#allocation6], 1 }
  0xc5   :  { %160 = vsyncpa [#allocation4], 1 }

</bundles_post_ra>
